<compile_context>
chip_gen: v6e
topology: v6e:2x2x1
jax: 0.10.0
libtpu: 0.0.40
codegen_flags: <defaults>
</compile_context>

<pallas_src>
import functools

import jax
import jax.numpy as jnp
from jax.experimental import pallas as pl
from jax.experimental.pallas import tpu as pltpu


def _tcm_loss_kernel(ga_ref, gm0_ref, gm1_ref, la_ref, out_ref,
                     *, M, N, nll_balancing):
    la = la_ref[...]                                     # (Bb, M+1, N+1) f32
    positive = ga_ref[...].astype(jnp.float32)           # (Bb, M, N)  gt assignment
    neg0 = (gm0_ref[...] == -1).astype(jnp.float32)      # (Bb, M, 1)  unmatched targets
    neg1 = (gm1_ref[...] == -1).astype(jnp.float32)      # (Bb, 1, N)  unmatched candidates

    def bsum(x):                                         # (Bb, R, C) -> (Bb, 1, 1)
        return jnp.sum(jnp.sum(x, axis=2, keepdims=True), axis=1, keepdims=True)

    num_pos = jnp.maximum(bsum(positive), 1.0)
    num_neg = jnp.maximum(bsum(neg0) + bsum(neg1), 1.0)

    la_rows = la[:, :M, :]                               # (Bb, M, N+1) sublane prefix
    la_inner = la_rows[:, :, :N]                         # (Bb, M, N)   lane prefix
    la_binrow = la[:, M:M + 1, :N]                       # (Bb, 1, N)   dustbin row

    nll_pos = -bsum(la_inner * positive) / num_pos

    # Dustbin column (lane N) selected via a VPU iota mask; neg0 broadcasts over lanes.
    col = jax.lax.broadcasted_iota(jnp.int32, la_rows.shape, 2)
    bin_col = (col == N).astype(jnp.float32)
    neg_sum = bsum(la_rows * bin_col * neg0) + bsum(la_binrow * neg1)
    nll_neg = -neg_sum / num_neg

    nll = nll_balancing * nll_pos + (1.0 - nll_balancing) * nll_neg

    # sinkhorn_norm = exp(log_assignment)[:, :-1].sum(2).mean(1)
    sinkhorn = bsum(jnp.exp(la_rows)) * (1.0 / M)

    out_ref[:, :, 0:1] = nll
    out_ref[:, :, 1:2] = nll_pos
    out_ref[:, :, 2:3] = nll_neg
    out_ref[:, :, 3:4] = num_pos
    out_ref[:, :, 4:5] = num_neg
    out_ref[:, :, 5:6] = sinkhorn


def target_candidate_matching_loss(gt_assignment, gt_matches0, gt_matches1,
                                   log_assignment, bin_score,
                                   nll_balancing=0.5, nll_weight=1.0):
    # Mirror the torch forward: these inputs carry a leading stack dim indexed [0].
    ga = gt_assignment[0].astype(jnp.int8)                 # (B, M, N)  1 byte/elem
    gm0 = gt_matches0[0].astype(jnp.int32)[:, :, None]     # (B, M, 1)
    gm1 = gt_matches1[0].astype(jnp.int32)[:, None, :]     # (B, 1, N)
    la = log_assignment.astype(jnp.float32)                # (B, M+1, N+1)

    B, M, N = ga.shape

    # Batch block size: amortize per-step overhead while staying well inside a
    # conservative (v7x) double-buffered VMEM budget; keep >= 2 grid steps when
    # possible so the parallel batch axis can shard across two TensorCores.
    per_batch_bytes = (M + 1) * (N + 1) * 4 + M * N + (M + N) * 4 + 64
    budget = 6 * 1024 * 1024
    bb = int(max(1, min(B, 32, budget // max(1, 2 * per_batch_bytes))))
    if B > 1:
        bb = min(bb, pl.cdiv(B, 2))
    grid = (pl.cdiv(B, bb),)

    kernel = functools.partial(_tcm_loss_kernel, M=M, N=N,
                               nll_balancing=float(nll_balancing))

    out = pl.pallas_call(
        kernel,
        out_shape=jax.ShapeDtypeStruct((B, 1, 6), jnp.float32),
        grid_spec=pltpu.PrefetchScalarGridSpec(
            num_scalar_prefetch=0,
            grid=grid,
            in_specs=[
                pl.BlockSpec((bb, M, N), lambda b: (b, 0, 0)),
                pl.BlockSpec((bb, M, 1), lambda b: (b, 0, 0)),
                pl.BlockSpec((bb, 1, N), lambda b: (b, 0, 0)),
                pl.BlockSpec((bb, M + 1, N + 1), lambda b: (b, 0, 0)),
            ],
            out_specs=pl.BlockSpec((bb, 1, 6), lambda b: (b, 0, 0)),
        ),
        compiler_params=pltpu.CompilerParams(
            dimension_semantics=("parallel",)),
    )(ga, gm0, gm1, la)

    out = out.reshape(B, 6)
    nll, nll_pos, nll_neg = out[:, 0], out[:, 1], out[:, 2]
    num_pos, num_neg, sink = out[:, 3], out[:, 4], out[:, 5]

    losses = {'total': jnp.zeros((), jnp.float32)}
    losses['assignment_nll'] = nll
    if nll_weight > 0:
        losses['total'] = nll * nll_weight
    losses['nll_pos'] = nll_pos
    losses['nll_neg'] = nll_neg
    losses['num_matchable'] = num_pos
    losses['num_unmatchable'] = num_neg
    losses['sinkhorn_norm'] = sink
    losses['bin_score'] = bin_score[None]
    # TODO(synk): metrics() (match precision/recall) is a separate method, not part of
    # forward(), and is left to plain JAX.
    return losses


def _reference(gt_assignment, gt_matches0, gt_matches1, log_assignment, bin_score,
               nll_balancing=0.5, nll_weight=1.0):
    ga = gt_assignment[0].astype(jnp.float32)
    gm0 = gt_matches0[0]
    gm1 = gt_matches1[0]
    neg0 = (gm0 == -1).astype(jnp.float32)
    neg1 = (gm1 == -1).astype(jnp.float32)
    num_pos = jnp.maximum(ga.sum((1, 2)), 1.0)
    num_neg = jnp.maximum(neg0.sum(1) + neg1.sum(1), 1.0)
    nll_pos = -(log_assignment[:, :-1, :-1] * ga).sum((1, 2)) / num_pos
    nll_neg = (-(log_assignment[:, :-1, -1] * neg0).sum(1)
               - (log_assignment[:, -1, :-1] * neg1).sum(1)) / num_neg
    nll = nll_balancing * nll_pos + (1 - nll_balancing) * nll_neg
    sink = jnp.exp(log_assignment)[:, :-1].sum(2).mean(1)
    return {'total': nll * nll_weight, 'assignment_nll': nll, 'nll_pos': nll_pos,
            'nll_neg': nll_neg, 'num_matchable': num_pos, 'num_unmatchable': num_neg,
            'sinkhorn_norm': sink, 'bin_score': bin_score[None]}


if __name__ == "__main__":
    key = jax.random.PRNGKey(0)
    k1, k2, k3, k4 = jax.random.split(key, 4)
    B, M, N = 4, 24, 20

    gt_matches0 = jax.random.randint(k1, (1, B, M), -1, N)      # -1 => unmatched
    gt_matches1 = jax.random.randint(k2, (1, B, N), -1, M)
    gt_assignment = jax.random.uniform(k3, (1, B, M, N)) > 0.8   # bool gt assignment
    log_assignment = jax.nn.log_softmax(
        jax.random.normal(k4, (B, M + 1, N + 1), jnp.float32), axis=-1)
    bin_score = jnp.asarray(2.3, jnp.float32)                    # module's learnable scalar

    losses = target_candidate_matching_loss(
        gt_assignment, gt_matches0, gt_matches1, log_assignment, bin_score)
    jax.block_until_ready(losses)

    ref = _reference(gt_assignment, gt_matches0, gt_matches1, log_assignment, bin_score)
    for k in ref:
        assert jnp.allclose(losses[k], ref[k], rtol=1e-5, atol=1e-5), k

    print("KERNEL_OK")
</pallas_src>

<mosaic_0001>
module attributes {stable_mosaic.version = 11 : i64} {
  func.func @_tcm_loss_kernel(%arg0: i32, %arg1: memref<2x24x20xi8, #tpu.memory_space<vmem>>, %arg2: memref<2x24x1xi32, #tpu.memory_space<vmem>>, %arg3: memref<2x1x20xi32, #tpu.memory_space<vmem>>, %arg4: memref<2x25x21xf32, #tpu.memory_space<vmem>>, %arg5: memref<2x1x6xf32, #tpu.memory_space<vmem>>) attributes {dimension_semantics = [#tpu.dimension_semantics<parallel>], iteration_bounds = array<i64: 2>, scalar_prefetch = 0 : i64, scratch_operands = 0 : i64, tpu.core_type = #tpu.core_type<tc>, window_params = [{transform_indices = @transform_0, window_bounds = array<i64: 2, 24, 20>}, {transform_indices = @transform_1, window_bounds = array<i64: 2, 24, 1>}, {transform_indices = @transform_2, window_bounds = array<i64: 2, 1, 20>}, {transform_indices = @transform_3, window_bounds = array<i64: 2, 25, 21>}, {transform_indices = @transform_4, window_bounds = array<i64: 2, 1, 6>}]} {
    %c0 = arith.constant 0 : index
    %c0_0 = arith.constant 0 : index
    %c0_1 = arith.constant 0 : index
    %0 = vector.load %arg4[%c0, %c0_0, %c0_1] : memref<2x25x21xf32, #tpu.memory_space<vmem>>, vector<2x25x21xf32>
    %c0_2 = arith.constant 0 : index
    %c0_3 = arith.constant 0 : index
    %c0_4 = arith.constant 0 : index
    %1 = vector.load %arg1[%c0_2, %c0_3, %c0_4] : memref<2x24x20xi8, #tpu.memory_space<vmem>>, vector<2x24x20xi8>
    %2 = arith.sitofp %1 : vector<2x24x20xi8> to vector<2x24x20xf32>
    %c0_5 = arith.constant 0 : index
    %c0_6 = arith.constant 0 : index
    %c0_7 = arith.constant 0 : index
    %3 = vector.load %arg2[%c0_5, %c0_6, %c0_7] : memref<2x24x1xi32, #tpu.memory_space<vmem>>, vector<2x24x1xi32>
    %c-1_i32 = arith.constant -1 : i32
    %4 = vector.broadcast %c-1_i32 : i32 to vector<2x24x1xi32>
    %5 = arith.cmpi eq, %3, %4 : vector<2x24x1xi32>
    %6 = arith.extui %5 : vector<2x24x1xi1> to vector<2x24x1xi32>
    %7 = arith.sitofp %6 : vector<2x24x1xi32> to vector<2x24x1xf32>
    %c0_8 = arith.constant 0 : index
    %c0_9 = arith.constant 0 : index
    %c0_10 = arith.constant 0 : index
    %8 = vector.load %arg3[%c0_8, %c0_9, %c0_10] : memref<2x1x20xi32, #tpu.memory_space<vmem>>, vector<2x1x20xi32>
    %c-1_i32_11 = arith.constant -1 : i32
    %9 = vector.broadcast %c-1_i32_11 : i32 to vector<2x1x20xi32>
    %10 = arith.cmpi eq, %8, %9 : vector<2x1x20xi32>
    %11 = arith.extui %10 : vector<2x1x20xi1> to vector<2x1x20xi32>
    %12 = arith.sitofp %11 : vector<2x1x20xi32> to vector<2x1x20xf32>
    %cst = arith.constant dense<0.000000e+00> : vector<2x24xf32>
    %13 = vector.multi_reduction <add>, %2, %cst [2] : vector<2x24x20xf32> to vector<2x24xf32>
    %14 = vector.shape_cast %13 : vector<2x24xf32> to vector<2x24x1xf32>
    %cst_12 = arith.constant dense<0.000000e+00> : vector<2x1xf32>
    %15 = vector.multi_reduction <add>, %14, %cst_12 [1] : vector<2x24x1xf32> to vector<2x1xf32>
    %16 = vector.shape_cast %15 : vector<2x1xf32> to vector<2x1x1xf32>
    %cst_13 = arith.constant 1.000000e+00 : f32
    %17 = vector.broadcast %cst_13 : f32 to vector<2x1x1xf32>
    %18 = arith.maximumf %16, %17 : vector<2x1x1xf32>
    %cst_14 = arith.constant dense<0.000000e+00> : vector<2x24xf32>
    %19 = vector.multi_reduction <add>, %7, %cst_14 [2] : vector<2x24x1xf32> to vector<2x24xf32>
    %20 = vector.shape_cast %19 : vector<2x24xf32> to vector<2x24x1xf32>
    %cst_15 = arith.constant dense<0.000000e+00> : vector<2x1xf32>
    %21 = vector.multi_reduction <add>, %20, %cst_15 [1] : vector<2x24x1xf32> to vector<2x1xf32>
    %22 = vector.shape_cast %21 : vector<2x1xf32> to vector<2x1x1xf32>
    %cst_16 = arith.constant dense<0.000000e+00> : vector<2x1xf32>
    %23 = vector.multi_reduction <add>, %12, %cst_16 [2] : vector<2x1x20xf32> to vector<2x1xf32>
    %24 = vector.shape_cast %23 : vector<2x1xf32> to vector<2x1x1xf32>
    %cst_17 = arith.constant dense<0.000000e+00> : vector<2x1xf32>
    %25 = vector.multi_reduction <add>, %24, %cst_17 [1] : vector<2x1x1xf32> to vector<2x1xf32>
    %26 = vector.shape_cast %25 : vector<2x1xf32> to vector<2x1x1xf32>
    %27 = arith.addf %22, %26 : vector<2x1x1xf32>
    %cst_18 = arith.constant 1.000000e+00 : f32
    %28 = vector.broadcast %cst_18 : f32 to vector<2x1x1xf32>
    %29 = arith.maximumf %27, %28 : vector<2x1x1xf32>
    %30 = vector.extract_strided_slice %0 {offsets = [0, 0, 0], sizes = [2, 24, 21], strides = [1, 1, 1]} : vector<2x25x21xf32> to vector<2x24x21xf32>
    %31 = vector.extract_strided_slice %30 {offsets = [0, 0, 0], sizes = [2, 24, 20], strides = [1, 1, 1]} : vector<2x24x21xf32> to vector<2x24x20xf32>
    %32 = vector.extract_strided_slice %0 {offsets = [0, 24, 0], sizes = [2, 1, 20], strides = [1, 1, 1]} : vector<2x25x21xf32> to vector<2x1x20xf32>
    %33 = arith.mulf %31, %2 : vector<2x24x20xf32>
    %cst_19 = arith.constant dense<0.000000e+00> : vector<2x24xf32>
    %34 = vector.multi_reduction <add>, %33, %cst_19 [2] : vector<2x24x20xf32> to vector<2x24xf32>
    %35 = vector.shape_cast %34 : vector<2x24xf32> to vector<2x24x1xf32>
    %cst_20 = arith.constant dense<0.000000e+00> : vector<2x1xf32>
    %36 = vector.multi_reduction <add>, %35, %cst_20 [1] : vector<2x24x1xf32> to vector<2x1xf32>
    %37 = vector.shape_cast %36 : vector<2x1xf32> to vector<2x1x1xf32>
    %cst_21 = arith.constant 0.000000e+00 : f32
    %38 = vector.broadcast %cst_21 : f32 to vector<2x1x1xf32>
    %39 = arith.subf %38, %37 : vector<2x1x1xf32>
    %40 = arith.divf %39, %18 : vector<2x1x1xf32>
    %41 = tpu.iota {dimensions = array<i32: 2>} : vector<2x24x21xi32>
    %c20_i32 = arith.constant 20 : i32
    %42 = vector.broadcast %c20_i32 : i32 to vector<2x24x21xi32>
    %43 = arith.cmpi eq, %41, %42 : vector<2x24x21xi32>
    %44 = arith.extui %43 : vector<2x24x21xi1> to vector<2x24x21xi32>
    %45 = arith.sitofp %44 : vector<2x24x21xi32> to vector<2x24x21xf32>
    %46 = arith.mulf %30, %45 : vector<2x24x21xf32>
    %47 = vector.broadcast %7 : vector<2x24x1xf32> to vector<2x24x21xf32>
    %48 = arith.mulf %46, %47 : vector<2x24x21xf32>
    %cst_22 = arith.constant dense<0.000000e+00> : vector<2x24xf32>
    %49 = vector.multi_reduction <add>, %48, %cst_22 [2] : vector<2x24x21xf32> to vector<2x24xf32>
    %50 = vector.shape_cast %49 : vector<2x24xf32> to vector<2x24x1xf32>
    %cst_23 = arith.constant dense<0.000000e+00> : vector<2x1xf32>
    %51 = vector.multi_reduction <add>, %50, %cst_23 [1] : vector<2x24x1xf32> to vector<2x1xf32>
    %52 = vector.shape_cast %51 : vector<2x1xf32> to vector<2x1x1xf32>
    %53 = arith.mulf %32, %12 : vector<2x1x20xf32>
    %cst_24 = arith.constant dense<0.000000e+00> : vector<2x1xf32>
    %54 = vector.multi_reduction <add>, %53, %cst_24 [2] : vector<2x1x20xf32> to vector<2x1xf32>
    %55 = vector.shape_cast %54 : vector<2x1xf32> to vector<2x1x1xf32>
    %cst_25 = arith.constant dense<0.000000e+00> : vector<2x1xf32>
    %56 = vector.multi_reduction <add>, %55, %cst_25 [1] : vector<2x1x1xf32> to vector<2x1xf32>
    %57 = vector.shape_cast %56 : vector<2x1xf32> to vector<2x1x1xf32>
    %58 = arith.addf %52, %57 : vector<2x1x1xf32>
    %cst_26 = arith.constant 0.000000e+00 : f32
    %59 = vector.broadcast %cst_26 : f32 to vector<2x1x1xf32>
    %60 = arith.subf %59, %58 : vector<2x1x1xf32>
    %61 = arith.divf %60, %29 : vector<2x1x1xf32>
    %cst_27 = arith.constant 5.000000e-01 : f32
    %62 = vector.broadcast %cst_27 : f32 to vector<2x1x1xf32>
    %63 = arith.mulf %62, %40 : vector<2x1x1xf32>
    %cst_28 = arith.constant 5.000000e-01 : f32
    %64 = vector.broadcast %cst_28 : f32 to vector<2x1x1xf32>
    %65 = arith.mulf %64, %61 : vector<2x1x1xf32>
    %66 = arith.addf %63, %65 : vector<2x1x1xf32>
    %67 = math.exp %30 : vector<2x24x21xf32>
    %cst_29 = arith.constant dense<0.000000e+00> : vector<2x24xf32>
    %68 = vector.multi_reduction <add>, %67, %cst_29 [2] : vector<2x24x21xf32> to vector<2x24xf32>
    %69 = vector.shape_cast %68 : vector<2x24xf32> to vector<2x24x1xf32>
    %cst_30 = arith.constant dense<0.000000e+00> : vector<2x1xf32>
    %70 = vector.multi_reduction <add>, %69, %cst_30 [1] : vector<2x24x1xf32> to vector<2x1xf32>
    %71 = vector.shape_cast %70 : vector<2x1xf32> to vector<2x1x1xf32>
    %cst_31 = arith.constant 0.0416666679 : f32
    %72 = vector.broadcast %cst_31 : f32 to vector<2x1x1xf32>
    %73 = arith.mulf %71, %72 : vector<2x1x1xf32>
    %c0_32 = arith.constant 0 : index
    %c0_33 = arith.constant 0 : index
    %c0_34 = arith.constant 0 : index
    %74 = vector.load %arg5[%c0_32, %c0_33, %c0_34] : memref<2x1x6xf32, #tpu.memory_space<vmem>>, vector<2x1x1xf32>
    tpu.vector_store %arg5[%c0_32, %c0_33, %c0_34], %66 {strides = array<i32>} : memref<2x1x6xf32, #tpu.memory_space<vmem>>, vector<2x1x1xf32>,
    %c0_35 = arith.constant 0 : index
    %c0_36 = arith.constant 0 : index
    %c1 = arith.constant 1 : index
    %75 = vector.load %arg5[%c0_35, %c0_36, %c1] : memref<2x1x6xf32, #tpu.memory_space<vmem>>, vector<2x1x1xf32>
    tpu.vector_store %arg5[%c0_35, %c0_36, %c1], %40 {strides = array<i32>} : memref<2x1x6xf32, #tpu.memory_space<vmem>>, vector<2x1x1xf32>,
    %c0_37 = arith.constant 0 : index
    %c0_38 = arith.constant 0 : index
    %c2 = arith.constant 2 : index
    %76 = vector.load %arg5[%c0_37, %c0_38, %c2] : memref<2x1x6xf32, #tpu.memory_space<vmem>>, vector<2x1x1xf32>
    tpu.vector_store %arg5[%c0_37, %c0_38, %c2], %61 {strides = array<i32>} : memref<2x1x6xf32, #tpu.memory_space<vmem>>, vector<2x1x1xf32>,
    %c0_39 = arith.constant 0 : index
    %c0_40 = arith.constant 0 : index
    %c3 = arith.constant 3 : index
    %77 = vector.load %arg5[%c0_39, %c0_40, %c3] : memref<2x1x6xf32, #tpu.memory_space<vmem>>, vector<2x1x1xf32>
    tpu.vector_store %arg5[%c0_39, %c0_40, %c3], %18 {strides = array<i32>} : memref<2x1x6xf32, #tpu.memory_space<vmem>>, vector<2x1x1xf32>,
    %c0_41 = arith.constant 0 : index
    %c0_42 = arith.constant 0 : index
    %c4 = arith.constant 4 : index
    %78 = vector.load %arg5[%c0_41, %c0_42, %c4] : memref<2x1x6xf32, #tpu.memory_space<vmem>>, vector<2x1x1xf32>
    tpu.vector_store %arg5[%c0_41, %c0_42, %c4], %29 {strides = array<i32>} : memref<2x1x6xf32, #tpu.memory_space<vmem>>, vector<2x1x1xf32>,
    %c0_43 = arith.constant 0 : index
    %c0_44 = arith.constant 0 : index
    %c5 = arith.constant 5 : index
    %79 = vector.load %arg5[%c0_43, %c0_44, %c5] : memref<2x1x6xf32, #tpu.memory_space<vmem>>, vector<2x1x1xf32>
    tpu.vector_store %arg5[%c0_43, %c0_44, %c5], %73 {strides = array<i32>} : memref<2x1x6xf32, #tpu.memory_space<vmem>>, vector<2x1x1xf32>,
    return
  }
  func.func @transform_0(%arg0: i32) -> (i32, i32, i32) {
    %c0_i32 = arith.constant 0 : i32
    %c0_i32_0 = arith.constant 0 : i32
    %c0_i32_1 = arith.constant 0 : i32
    return %arg0, %c0_i32, %c0_i32_0 : i32, i32, i32
  }
  func.func @transform_1(%arg0: i32) -> (i32, i32, i32) {
    %c0_i32 = arith.constant 0 : i32
    %c0_i32_0 = arith.constant 0 : i32
    %c0_i32_1 = arith.constant 0 : i32
    return %arg0, %c0_i32, %c0_i32_0 : i32, i32, i32
  }
  func.func @transform_2(%arg0: i32) -> (i32, i32, i32) {
    %c0_i32 = arith.constant 0 : i32
    %c0_i32_0 = arith.constant 0 : i32
    %c0_i32_1 = arith.constant 0 : i32
    return %arg0, %c0_i32, %c0_i32_0 : i32, i32, i32
  }
  func.func @transform_3(%arg0: i32) -> (i32, i32, i32) {
    %c0_i32 = arith.constant 0 : i32
    %c0_i32_0 = arith.constant 0 : i32
    %c0_i32_1 = arith.constant 0 : i32
    return %arg0, %c0_i32, %c0_i32_0 : i32, i32, i32
  }
  func.func @transform_4(%arg0: i32) -> (i32, i32, i32) {
    %c0_i32 = arith.constant 0 : i32
    %c0_i32_0 = arith.constant 0 : i32
    %c0_i32_1 = arith.constant 0 : i32
    return %arg0, %c0_i32, %c0_i32_0 : i32, i32, i32
  }
}

</mosaic_0001>

<bundles_post_ra>
// kernel: tpu_custom_call.1
= control target key start
LH: loop header
LB: loop body
LE: loop exit
PB: predicated region body
PF: predicated region fallthrough
CT: control target
= control target key end

     0   :  { %9 = vsyncpa [#allocation3], 0  ;;  %s1203_s0 = inlined_call_operand.vmem [shape: s8[4,24,20], index: 0, kind: input, shape index: {}]   ;;  %s1204_s1 = inlined_call_operand.vmem [shape: s32[4,24,1], index: 1, kind: input, shape index: {}]   ;;  %s1205_s2 = inlined_call_operand.vmem [shape: s32[4,1,20], index: 2, kind: input, shape index: {}]   ;;  %s1206_s3 = inlined_call_operand.vmem [shape: f32[4,25,21], index: 3, kind: input, shape index: {}]   ;;  %s1207_s4 = inlined_call_operand.hbm [shape: f32[4,1,6], index: 4, kind: output, shape index: {}]  }
   0x1   :  { %11 = vsyncpa [#allocation3 + $0x1], 0  ;;  %s972_s15 = smov 0   ;;  %s974_s16 = smov 0  }
   0x2   :  { %s976_s17 = smov 0   ;;  %s978_s18 = smov 0  }
   0x3 LB: > { %s993_s19 = sadd.s32 4294967295, %s938_s18   ;;  %s751_s20 = sadd.s32 4294967294, %s938_s18   ;;  %s938_s18 = sphi %s978_s18, %s1213_s18   ;;  %s934_s17 = sphi %s976_s17, %s1212_s17   ;;  %s930_s16 = sphi %s974_s16, %s1211_s16   ;;  %s926_s15 = sphi %s972_s15, %s1210_s15  }
   0x4   : > { %s997_s21 = sadd.s32 1, %s938_s18   ;;  %s128_s22 = sadd.s32 1, %s934_s17 }
   0x5   : > { %s125_s23 = ssub.s32 %s938_s18, %s997_s21  ;;  %p138_p0 = scmp.ne.s32.totalorder %s934_s17, %s930_s16 }
   0x6   : > { %p126_p1 = scmp.eq.s32.totalorder %s125_s23, 0  ;;  %p139_p2 = scmp.eq.s32.totalorder %s993_s19, 1 }
   0x7   : > { %p144_p3 = scmp.ne.s32.totalorder %s930_s16, %s926_s15  ;;  %p145_p4 = scmp.eq.s32.totalorder %s751_s20, 1 }
   0x8   : > { %s1008_s24 = scalar_select %p126_p1, %s934_s17, %s128_s22  }
   0x9   : > { %p1010_p5 = por %p139_p2, %p138_p0  ;;  %p1014_p6 = por %p145_p4, %p144_p3 }
   0xa   : > { %p754_p7 = scmp.ge.s32.totalorder %s938_s18, 1  ;;  %p201_p8 = scmp.lt.s32.totalorder %s938_s18, 3 }
   0xc   : > { %p202_p9 = pnand %p754_p7, %p201_p8 }
   0xd   : > { %s756_s27 = sshll.u32 (!%p202_p9), %s993_s19, 1  ;;  %s942_s23 = smov (!%p202_p9), 2  }
   0xe   : > { %205 = sbr.rel (%p202_p9) target bundleno = 457 (0x1c9), region = 36  ;;  %p245_p10 = scmp.lt.s32.totalorder (!%p202_p9), %s756_s27, 3 }
   0xf   : > { %s779_s5 = sshll.u32 (!%p202_p9), %s993_s19, 5  ;;  %s944_s11 = smov (!%p202_p9), [#allocation2]  }
  0x13   : > { %v940_v0 = vmov 0   ;;  %s1215_s27 = smov (!%p245_p10, %s756_s27), 3  ;;  %v454_v1 = vlaneseq  ;;  %vm372_vm0 = vcmask 7168   ;;  %v941_v7 = vmov 0.0  }
  0x14   : > { %841 = vset.pattern.permute.xlu0 %v940_v0  ;;  %852 = vset.pattern.permute.xlu1 %v940_v0  ;;  %s795_s28 = smul.u32 24, %s1215_s27  ;;  %s778_s29 = sshll.u32 %s1215_s27, 5  ;;  %vm395_vm10 = vcmask 155648   ;;  %vm501_vm11 = vcmask 171008   ;;  %vm329_vm12 = vcmask 162816   ;;  %vm608_vm13 = vcmask 0  }
  0x15   : > { %v455_v2 = vand.u32 127, %v454_v1  ;;  %s1031_s9 = scalar_lea.vmem %s1206_s3, %s778_s29  ;;  %s261_s12 = scalar_lea.vmem %s1205_s2, %s1215_s27  ;;  %vm611_vm14 = vcmask 8200   ;;  %vm622_vm15 = vcmask 16400  }
  0x16   : > { %s256_s6 = scalar_lea.vmem %s1204_s1, %s795_s28  ;;  %v1038_v20 = vld [vmem:[%s1031_s9 + $0x8] sm:$0xff]  ;;  %v1046_v26 = vld [vmem:[%s1031_s9] sm:$0xff]  ;;  %v1062_v37 = vld [vmem:[%s1031_s9 + $0x10] sm:$0xff]  ;;  %s794_s13 = smul.u32 6, %s1215_s27 }
  0x17   : > { %v297_v3 = vld [vmem:[%s256_s6] sm:$0xff]  ;;  %v298_v4 = vld [vmem:[%s256_s6 + $0x8] sm:$0xff]  ;;  %v300_v5 = vld [vmem:[%s256_s6 + $0x18] sm:$0xff]  ;;  %vm456_vm4 = vcmp.eq.s32.totalorder %v455_v2, 20  ;;  %s943_s27 = smov 4   ;;  %s241_s28 = sand.u32 1, %s930_s16  }
  0x18   : > { %vm303_vm1 = vcmp.eq.s32.totalorder %v297_v3, 4294967295  ;;  %vm304_vm2 = vcmp.eq.s32.totalorder %v298_v4, 4294967295  ;;  %v301_v6 = vld [vmem:[%s256_s6 + $0x20] sm:$0xff]  ;;  %vm306_vm3 = vcmp.eq.s32.totalorder %v300_v5, 4294967295  ;;  %v299_v11 = vld [vmem:[%s256_s6 + $0x10] sm:$0xff]  ;;  %v302_v12 = vld [vmem:[%s256_s6 + $0x28] sm:$0xff]  ;;  %s249_s22 = scalar_lea.vmem %s1203_s0, %s794_s13 }
  0x19   : > { %v764_v8 = vsel %vm303_vm1, 1.0, %v941_v7  ;;  %v765_v9 = vsel %vm304_vm2, 1.0, %v941_v7  ;;  %vm307_vm5 = vcmp.eq.s32.totalorder %v301_v6, 4294967295  ;;  %v767_v10 = vsel %vm306_vm3, 1.0, %v941_v7  ;;  %v1049_v27 = vld [vmem:[%s1031_s9 + $0x20] sm:$0xff]  ;;  %v1055_v32 = vld [vmem:[%s1031_s9 + $0x28] sm:$0xff] }
  0x1a   : > { %v374_v13 = vsel %vm372_vm0, %v765_v9, 0.0  ;;  %v842_v14 = vpack.i.bf16 %v765_v9, %v764_v8  ;;  %v373_v15 = vsel %vm372_vm0, %v764_v8, 0.0  ;;  %v768_v16 = vsel %vm307_vm5, 1.0, %v941_v7  ;;  %v322_v35 = vld [vmem:[%s261_s12 + $0x1] sm:$0x1]  ;;  %v1067_v40 = vld [vmem:[%s1031_s9 + $0x30] sm:$0xff] }
  0x1b   : > { %v375_v17 = vadd.f32 %v374_v13, %v373_v15  ;;  %v385_v18 = vsel %vm372_vm0, %v768_v16, 0.0  ;;  %v384_v19 = vsel %vm372_vm0, %v767_v10, 0.0  ;;  %v847_v21 = vpack.i.bf16 %v768_v16, %v767_v10  ;;  %v321_v36 = vld [vmem:[%s261_s12] sm:$0x1]  ;;  %v274_v46 = vld [vmem:[%s1031_s9 + $0x18] sm:$0x1] }
  0x1c   : > { %843 = vperm.xlu0 %841, %v842_v14   ;;  %vm305_vm6 = vcmp.eq.s32.totalorder %v299_v11, 4294967295  ;;  %vm308_vm7 = vcmp.eq.s32.totalorder %v302_v12, 4294967295  ;;  %v386_v22 = vadd.f32 %v385_v18, %v384_v19  ;;  %v772_v25 = vsel %vm456_vm4, 1.0, %v941_v7  ;;  %v278_v47 = vld [vmem:[%s1031_s9 + $0x38] sm:$0x1]  ;;  %v781_v5 = vld [vmem:[%s249_s22] sm:$0xff]   ;;  %s1153_s9 = scalar_lea.hbm %s1207_s4, %s779_s5 }
  0x1d   : > { %v766_v23 = vsel %vm305_vm6, 1.0, %v941_v7  ;;  %v769_v24 = vsel %vm308_vm7, 1.0, %v941_v7  ;;  %v460_v31 = vmul.f32 %v772_v25, %v1038_v20  ;;  %v459_v38 = vmul.f32 %v772_v25, %v1046_v26  ;;  %v793_v14 = vld [vmem:[%s249_s22 + $0x8] sm:$0xf]   ;;  %s755_s29 = sshll.u32 %s241_s28, 1  ;;  %s1163_s19 = scalar_lea.sflag [#allocation3], %s241_s28 }
  0x1e   : > { %v387_v28 = vsel %vm372_vm0, %v769_v24, 0.0  ;;  %v853_v29 = vpack.i.bf16 %v769_v24, %v766_v23  ;;  %v376_v30 = vsel %vm372_vm0, %v766_v23, 0.0  ;;  %v462_v39 = vmul.f32 %v772_v25, %v1049_v27  ;;  %s1134_s30 = scalar_lea.vmem [#allocation2], %s755_s29  ;;  %s882_s12 = sshll.u32 %s944_s11, 4  ;;  %s883_s12 = int_to_ptr.vmem [resolvable:$false] %s882_s12 }
  0x1f   : > { %v1057_v33 = vadd.f32 %v387_v28, %v386_v22  ;;  %v1059_v34 = vadd.f32 %v376_v30, %v375_v17  ;;  %v463_v41 = vmul.f32 %v772_v25, %v1055_v32  ;;  %vm324_vm8 = vcmp.eq.s32.totalorder %v322_v35, 4294967295  ;;  %s656_s6 = sshll.u32 %s1134_s30, 4  ;;  %s884_s13 = scalar_lea.vmem %s883_s12, 64  ;;  %s1155_s6 = int_to_ptr.vmem [resolvable:$true] %s656_s6 }
  0x20   : > { %848 = vperm.xlu0 %841, %v847_v21   ;;  %854 = vperm.xlu1 %852, %v853_v29   ;;  %vm323_vm9 = vcmp.eq.s32.totalorder %v321_v36, 4294967295  ;;  %v461_v42 = vmul.f32 %v772_v25, %v1062_v37  ;;  %v464_v43 = vmul.f32 %v772_v25, %v1067_v40  ;;  %v771_v44 = vsel %vm324_vm8, 1.0, %v941_v7  ;;  %s878_s10 = scalar_lea.vmem %s1155_s6, 32  ;;  %p885_p0 = scmp.lt.s32.totalorder %s1155_s6, %s883_s12 }
  0x21   : > { %v770_v45 = vsel %vm323_vm9, 1.0, %v941_v7  ;;  %v537_v49 = vmul.f32 %v771_v44, %v278_v47  ;;  %v399_v53 = vsel %vm395_vm10, %v771_v44, 0.0  ;;  %v783_v10 = vunpack.c.1.s8 %v781_v5  ;;  %p879_p11 = scmp.ne.s32.totalorder %s1155_s6, %s878_s10  ;;  %p886_p1 = scmp.lt.s32.totalorder %s884_s13, %s878_s10 }
  0x22   : > { %v536_v48 = vmul.f32 %v770_v45, %v274_v46  ;;  %v396_v52 = vsel %vm395_vm10, %v770_v45, 0.0  ;;  %v782_v11 = vunpack.c.0.s8 %v781_v5  ;;  %v790_v17 = vunpack.c.0.s8 %v793_v14 }
  0x23   : > { %v541_v51 = vsel %vm395_vm10, %v537_v49, 0.0  ;;  %v292_v15 = vcvt.s32.f32 %v783_v10  ;;  %v787_v18 = vunpack.c.3.s8 %v781_v5  ;;  %v791_v24 = vunpack.c.1.s8 %v793_v14  ;;  %p880_p12 = pnand %p879_p11, %p1010_p5  ;;  %p887_p2 = por %p886_p1, %p885_p0 }
  0x24   : > { %v538_v50 = vsel %vm395_vm10, %v536_v48, 0.0  ;;  %v291_v16 = vcvt.s32.f32 %v782_v11  ;;  %v295_v22 = vcvt.s32.f32 %v790_v17  ;;  %v786_v25 = vunpack.c.2.s8 %v781_v5 }
  0x25   : > { %v333_v19 = vsel %vm329_vm12, %v292_v15, 0.0  ;;  %v294_v23 = vcvt.s32.f32 %v787_v18  ;;  %v562_v28 = vmul.f32 1.442695, %v1038_v20  ;;  %v560_v29 = vmul.f32 1.442695, %v1046_v26  ;;  %p881_p13 = pneg %p880_p12 }
  0x26   : > { %v330_v21 = vsel %vm329_vm12, %v291_v16, 0.0  ;;  %v342_v30 = vsel %vm329_vm12, %v295_v22, 0.0  ;;  %v296_v35 = vcvt.s32.f32 %v791_v24  ;;  %v293_v36 = vcvt.s32.f32 %v786_v25 }
  0x27   : > { %858 = vpow2.f32 %v562_v28  ;;  %v408_v44 = vmul.f32 %v291_v16, %v1046_v26  ;;  %v564_v45 = vmul.f32 1.442695, %v1062_v37  ;;  %v570_v46 = vmul.f32 1.442695, %v1067_v40  ;;  %p888_p3 = pnand %p887_p2, %p881_p13 }
  0x28   : > { %860 = vpow2.f32 %v560_v29  ;;  %v412_v49 = vmul.f32 %v295_v22, %v1055_v32  ;;  %vm625_vm0 = vcmask 24600   ;;  %vm636_vm1 = vcmask 32800  }
  0x29   : > { %v414_v48 = vsel %vm329_vm12, %v408_v44, 0.0  ;;  %vm639_vm2 = vcmask 41000  }
  0x3f   : > { %397 = vadd.xlane.f32.xlu0 %v396_v52  ;;  %v410_v52 = vmul.f32 %v293_v36, %v1062_v37 }
  0x44   : > { %400 = vadd.xlane.f32.xlu1 %v399_v53  ;;  %v859_v53 = vpop.eup %858 }
  0x97   : > { %v844_v54 = vpop.permute.xlu0 %843 }
  0x98   : > { %v846_v55 = vunpack.i.h.bf16 %v844_v54  ;;  %v845_v56 = vunpack.i.l.bf16 %v844_v54  ;;  %v861_v54 = vpop.eup %860 }
  0x9a   : > { %v496_v57 = vmul.f32 %v846_v55, %v460_v31  ;;  %v495_v58 = vmul.f32 %v845_v56, %v459_v38  ;;  %v339_v31 = vsel %vm329_vm12, %v294_v23, 0.0  ;;  %v566_v38 = vmul.f32 1.442695, %v1049_v27 }
  0x9b   : > { %v849_v59 = vpop.permute.xlu0 %848  ;;  %v855_v60 = vpop.permute.xlu1 %854 }
  0x9c   : > { %v851_v61 = vunpack.i.h.bf16 %v849_v59  ;;  %v850_v62 = vunpack.i.l.bf16 %v849_v59  ;;  %v505_v63 = vsel %vm501_vm11, %v496_v57, 0.0  ;;  %v502_v0 = vsel %vm501_vm11, %v495_v58, 0.0 }
  0x9d   : > { %506 = vadd.xlane.f32.xlu0 %v505_v63  ;;  %503 = vadd.xlane.f32.xlu1 %v502_v0  ;;  %v857_v1 = vunpack.i.h.bf16 %v855_v60  ;;  %v856_v2 = vunpack.i.l.bf16 %v855_v60  ;;  %862 = vpow2.f32 %v566_v38  ;;  %v572_v57 = vsel %vm501_vm11, %v861_v54, 0.0 }
  0x9e   : > { %v498_v3 = vmul.f32 %v850_v62, %v462_v39  ;;  %v499_v4 = vmul.f32 %v851_v61, %v463_v41  ;;  %v568_v39 = vmul.f32 1.442695, %v1055_v32  ;;  %v345_v41 = vsel %vm329_vm12, %v296_v35, 0.0 }
  0x9f   : > { %v497_v6 = vmul.f32 %v856_v2, %v461_v42  ;;  %v500_v7 = vmul.f32 %v857_v1, %v464_v43  ;;  %v336_v42 = vsel %vm329_vm12, %v293_v36, 0.0  ;;  %v409_v43 = vmul.f32 %v292_v15, %v1038_v20 }
  0xa0   : > { %v511_v8 = vsel %vm501_vm11, %v498_v3, 0.0  ;;  %v514_v9 = vsel %vm501_vm11, %v499_v4, 0.0  ;;  %864 = vpow2.f32 %v568_v39  ;;  %v426_v20 = vsel %vm329_vm12, %v412_v49, 0.0 }
  0xa1   : > { %512 = vadd.xlane.f32.xlu0 %v511_v8  ;;  %515 = vadd.xlane.f32.xlu1 %v514_v9  ;;  %v508_v12 = vsel %vm501_vm11, %v497_v6, 0.0  ;;  %v517_v13 = vsel %vm501_vm11, %v500_v7, 0.0  ;;  %v417_v47 = vsel %vm329_vm12, %v409_v43, 0.0  ;;  %866 = vpow2.f32 %v564_v45 }
  0xa2   : > { %868 = vpow2.f32 %v570_v46  ;;  %v575_v58 = vsel %vm501_vm11, %v859_v53, 0.0  ;;  %v378_v63 = vrot.slane %v1059_v34, 4  ;;  %v389_v0 = vrot.slane %v1057_v33, 4 }
  0xa4   : > { %v379_v1 = vadd.f32 %v378_v63, %v1059_v34  ;;  %v390_v2 = vadd.f32 %v389_v0, %v1057_v33 }
  0xa5   : > { %509 = vadd.xlane.f32.xlu0 %v508_v12  ;;  %518 = vadd.xlane.f32.xlu1 %v517_v13 }
  0xa6   : > { %v380_v3 = vrot.slane %v379_v1, 2  ;;  %v391_v4 = vrot.slane %v390_v2, 2 }
  0xa8   : > { %v381_v5 = vadd.f32 %v380_v3, %v379_v1  ;;  %v392_v6 = vadd.f32 %v391_v4, %v390_v2 }
  0xa9   : > { %539 = vadd.xlane.f32.xlu0 %v538_v50  ;;  %542 = vadd.xlane.f32.xlu1 %v541_v51  ;;  %v411_v50 = vmul.f32 %v294_v23, %v1049_v27  ;;  %v413_v51 = vmul.f32 %v296_v35, %v1067_v40  ;;  %v420_v27 = vsel %vm329_vm12, %v410_v52, 0.0 }
  0xaa   : > { %v863_v55 = vpop.eup %862  ;;  %v382_v9 = vrot.slane %v381_v5, 1  ;;  %v393_v10 = vrot.slane %v392_v6, 1 }
  0xab   : > { %v423_v26 = vsel %vm329_vm12, %v411_v50, 0.0  ;;  %v429_v32 = vsel %vm329_vm12, %v413_v51, 0.0  ;;  %v581_v40 = vsel %vm501_vm11, %v863_v55, 0.0 }
  0xac   : > { %v383_v11 = vadd.f32 %v382_v9, %v381_v5  ;;  %v394_v14 = vadd.f32 %v393_v10, %v392_v6 }
  0xad   : > { %334 = vadd.xlane.f32.xlu1 %v333_v19  ;;  %331 = vadd.xlane.f32.xlu0 %v330_v21  ;;  %v865_v56 = vpop.eup %864 }
  0xae   : > { %v867_v59 = vpop.eup %866  ;;  %v584_v60 = vsel %vm501_vm11, %v865_v56, 0.0 }
  0xaf   : > { %v869_v37 = vpop.eup %868  ;;  %v578_v61 = vsel %vm501_vm11, %v867_v59, 0.0 }
  0xb0   : > { %v587_v62 = vsel %vm501_vm11, %v869_v37, 0.0 }
  0xb1   : > { %343 = vadd.xlane.f32.xlu1 %v342_v30  ;;  %340 = vadd.xlane.f32.xlu0 %v339_v31 }
  0xb5   : > { %346 = vadd.xlane.f32.xlu1 %v345_v41  ;;  %337 = vadd.xlane.f32.xlu0 %v336_v42 }
  0xb9   : > { %418 = vadd.xlane.f32.xlu1 %v417_v47  ;;  %415 = vadd.xlane.f32.xlu0 %v414_v48 }
  0xbd   : > { %427 = vadd.xlane.f32.xlu1 %v426_v20  ;;  %424 = vadd.xlane.f32.xlu0 %v423_v26 }
  0xc1   : > { %430 = vadd.xlane.f32.xlu1 %v429_v32  ;;  %421 = vadd.xlane.f32.xlu0 %v420_v27 }
  0xc5   : > { %573 = vadd.xlane.f32.xlu0 %v572_v57  ;;  %576 = vadd.xlane.f32.xlu1 %v575_v58 }
  0xc8   : > { %v398_v8 = vpop.xlane.xlu0 %397 }
  0xc9   : > { %582 = vadd.xlane.f32.xlu0 %v581_v40  ;;  %585 = vadd.xlane.f32.xlu1 %v584_v60  ;;  %v1118_v15 = vadd.f32 %v398_v8, %v383_v11 }
  0xcb   : > { %v406_v33 = vmax.f32 %v1118_v15, 1.0 }
  0xcd   : > { %579 = vadd.xlane.f32.xlu0 %v578_v61  ;;  %588 = vadd.xlane.f32.xlu1 %v587_v62  ;;  %v401_v7 = vpop.xlane.xlu1 %400  ;;  %870 = vrcp.f32 %v406_v33 }
  0xce   : > { %v405_v18 = vadd.f32 %v401_v7, %v394_v14 }
  0xd0   : > { %v407_v23 = vmax.f32 %v405_v18, 1.0 }
  0xd2   : > { %872 = vrcp.f32 %v407_v23 }
  0xda   : > { %v871_v32 = vpop.eup %870 }
  0xdf   : > { %v873_v58 = vpop.eup %872 }
 0x126   : > { %v507_v12 = vpop.xlane.xlu0 %506  ;;  %v504_v13 = vpop.xlane.xlu1 %503 }
 0x127   : > { %v520_v34 = vadd.f32 %v507_v12, %v504_v13 }
 0x12a   : > { %v513_v16 = vpop.xlane.xlu0 %512  ;;  %v516_v17 = vpop.xlane.xlu1 %515 }
 0x12b   : > { %v528_v19 = vadd.f32 %v516_v17, %v513_v16 }
 0x12e   : > { %v510_v21 = vpop.xlane.xlu0 %509  ;;  %v519_v22 = vpop.xlane.xlu1 %518 }
 0x12f   : > { %v521_v24 = vadd.f32 %v520_v34, %v510_v21  ;;  %v529_v25 = vadd.f32 %v528_v19, %v519_v22 }
 0x131   : > { %v522_v28 = vrot.slane %v521_v24, 4  ;;  %v530_v29 = vrot.slane %v529_v25, 4 }
 0x132   : > { %v540_v30 = vpop.xlane.xlu0 %539  ;;  %v543_v31 = vpop.xlane.xlu1 %542 }
 0x133   : > { %v523_v35 = vadd.f32 %v522_v28, %v521_v24  ;;  %v531_v36 = vadd.f32 %v530_v29, %v529_v25 }
 0x135   : > { %v524_v38 = vrot.slane %v523_v35, 2  ;;  %v532_v39 = vrot.slane %v531_v36, 2 }
 0x136   : > { %v335_v41 = vpop.xlane.xlu1 %334  ;;  %v332_v42 = vpop.xlane.xlu0 %331 }
 0x137   : > { %v525_v43 = vadd.f32 %v524_v38, %v523_v35  ;;  %v533_v44 = vadd.f32 %v532_v39, %v531_v36  ;;  %v348_v20 = vadd.f32 %v335_v41, %v332_v42 }
 0x139   : > { %v526_v45 = vrot.slane %v525_v43, 1  ;;  %v534_v46 = vrot.slane %v533_v44, 1 }
 0x13a   : > { %v344_v47 = vpop.xlane.xlu1 %343  ;;  %v341_v48 = vpop.xlane.xlu0 %340 }
 0x13b   : > { %v527_v49 = vadd.f32 %v526_v45, %v525_v43  ;;  %v535_v50 = vadd.f32 %v534_v46, %v533_v44  ;;  %v356_v26 = vadd.f32 %v344_v47, %v341_v48 }
 0x13d   : > { %v546_v51 = vadd.f32 %v540_v30, %v527_v49  ;;  %v547_v52 = vadd.f32 %v543_v31, %v535_v50 }
 0x13e   : > { %v347_v53 = vpop.xlane.xlu1 %346  ;;  %v338_v54 = vpop.xlane.xlu0 %337 }
 0x13f   : > { %v548_v27 = vsub.f32 0.0, %v546_v51  ;;  %v549_v55 = vsub.f32 0.0, %v547_v52  ;;  %v357_v56 = vadd.f32 %v356_v26, %v347_v53  ;;  %v349_v57 = vadd.f32 %v348_v20, %v338_v54 }
 0x141   : > { %v551_v59 = vmul.f32 %v871_v32, %v548_v27  ;;  %v553_v37 = vmul.f32 %v873_v58, %v549_v55  ;;  %v358_v40 = vrot.slane %v357_v56, 4  ;;  %v350_v60 = vrot.slane %v349_v57, 4 }
 0x142   : > { %v419_v61 = vpop.xlane.xlu1 %418  ;;  %v416_v62 = vpop.xlane.xlu0 %415 }
 0x143   : > { %v359_v63 = vadd.f32 %v358_v40, %v357_v56  ;;  %v351_v0 = vadd.f32 %v350_v60, %v349_v57  ;;  %618 = vrot.lane.b32.xlu1 %v553_v37, %s942_s23  ;;  %616 = vrot.lane.b32.xlu0 %v551_v59, %s942_s23  ;;  %v432_v3 = vadd.f32 %v419_v61, %v416_v62  ;;  %v557_v43 = vmul.f32 0.5, %v553_v37 }
 0x144   : > { %v556_v45 = vmul.f32 0.5, %v551_v59 }
 0x145   : > { %v360_v1 = vrot.slane %v359_v63, 2  ;;  %v352_v2 = vrot.slane %v351_v0, 2 }
 0x146   : > { %v428_v4 = vpop.xlane.xlu1 %427  ;;  %v425_v5 = vpop.xlane.xlu0 %424 }
 0x147   : > { %v361_v6 = vadd.f32 %v360_v1, %v359_v63  ;;  %v353_v7 = vadd.f32 %v352_v2, %v351_v0  ;;  %630 = vrot.lane.b32.xlu1 %v406_v33, %s943_s27  ;;  %632 = vrot.lane.b32.xlu0 %v407_v23, %s943_s27  ;;  %v440_v8 = vadd.f32 %v428_v4, %v425_v5 }
 0x149   : > { %v362_v9 = vrot.slane %v361_v6, 1  ;;  %v354_v10 = vrot.slane %v353_v7, 1 }
 0x14a   : > { %v431_v11 = vpop.xlane.xlu1 %430  ;;  %v422_v12 = vpop.xlane.xlu0 %421 }
 0x14b   : > { %v1121_v13 = vadd.f32 %v362_v9, %v361_v6  ;;  %v1123_v14 = vadd.f32 %v354_v10, %v353_v7  ;;  %v441_v15 = vadd.f32 %v440_v8, %v431_v11  ;;  %v433_v16 = vadd.f32 %v432_v3, %v422_v12 }
 0x14d   : > { %v365_v17 = vmax.f32 %v1121_v13, 1.0  ;;  %v364_v18 = vmax.f32 %v1123_v14, 1.0  ;;  %v442_v34 = vrot.slane %v441_v15, 4  ;;  %v434_v19 = vrot.slane %v433_v16, 4 }
 0x14e   : > { %v574_v49 = vpop.xlane.xlu0 %573  ;;  %v577_v50 = vpop.xlane.xlu1 %576 }
 0x14f   : > { %874 = vrcp.f32 %v365_v17  ;;  %v443_v33 = vadd.f32 %v442_v34, %v441_v15  ;;  %v435_v21 = vadd.f32 %v434_v19, %v433_v16  ;;  %v590_v51 = vadd.f32 %v577_v50, %v574_v49 }
 0x150   : > { %876 = vrcp.f32 %v364_v18 }
 0x151   : > { %v444_v22 = vrot.slane %v443_v33, 2  ;;  %v436_v23 = vrot.slane %v435_v21, 2 }
 0x152   : > { %v583_v20 = vpop.xlane.xlu0 %582  ;;  %v586_v26 = vpop.xlane.xlu1 %585 }
 0x153   : > { %v445_v24 = vadd.f32 %v444_v22, %v443_v33  ;;  %v437_v25 = vadd.f32 %v436_v23, %v435_v21  ;;  %v598_v52 = vadd.f32 %v586_v26, %v583_v20 }
 0x155   : > { %v446_v28 = vrot.slane %v445_v24, 1  ;;  %v438_v29 = vrot.slane %v437_v25, 1 }
 0x156   : > { %v580_v53 = vpop.xlane.xlu0 %579  ;;  %v589_v54 = vpop.xlane.xlu1 %588 }
 0x157   : > { %v447_v30 = vadd.f32 %v446_v28, %v445_v24  ;;  %v439_v31 = vadd.f32 %v438_v29, %v437_v25  ;;  %v591_v32 = vadd.f32 %v590_v51, %v580_v53  ;;  %v599_v27 = vadd.f32 %v598_v52, %v589_v54 }
 0x159   : > { %v449_v35 = vsub.f32 0.0, %v447_v30  ;;  %v448_v36 = vsub.f32 0.0, %v439_v31  ;;  %v592_v55 = vrot.slane %v591_v32, 4  ;;  %v600_v56 = vrot.slane %v599_v27, 4 }
 0x15b   : > { %v593_v57 = vadd.f32 %v592_v55, %v591_v32  ;;  %v601_v58 = vadd.f32 %v600_v56, %v599_v27 }
 0x15c   : > { %v875_v38 = vpop.eup %874 }
 0x15d   : > { %v877_v39 = vpop.eup %876  ;;  %v453_v41 = vmul.f32 %v875_v38, %v449_v35  ;;  %v594_v59 = vrot.slane %v593_v57, 2  ;;  %v602_v37 = vrot.slane %v601_v58, 2 }
 0x15e   : > { %v451_v42 = vmul.f32 %v877_v39, %v448_v36 }
 0x15f   : > { %v555_v44 = vmul.f32 0.5, %v453_v41  ;;  %v595_v40 = vadd.f32 %v594_v59, %v593_v57  ;;  %v603_v60 = vadd.f32 %v602_v37, %v601_v58 }
 0x160   : > { %v554_v46 = vmul.f32 0.5, %v451_v42 }
 0x161   : > { %v559_v47 = vadd.f32 %v557_v43, %v555_v44  ;;  %v596_v61 = vrot.slane %v595_v40, 1  ;;  %v604_v62 = vrot.slane %v603_v60, 1 }
 0x162   : > { %v558_v48 = vadd.f32 %v556_v45, %v554_v46 }
 0x163   : > { %610 = vst.msk [vmem:[%s1134_s30 + $0x1] sm:$0x1] %vm608_vm13, %v559_v47  ;;  %v597_v63 = vadd.f32 %v596_v61, %v595_v40  ;;  %v605_v0 = vadd.f32 %v604_v62, %v603_v60 }
 0x164   : > { %613 = vst.msk [vmem:[%s1134_s30 + $0x1] sm:$0x1] %vm611_vm14, %v453_v41 }
 0x165   : > { %609 = vst.msk [vmem:[%s1134_s30] sm:$0x1] %vm608_vm13, %v558_v48  ;;  %v606_v3 = vmul.f32 0.041666668, %v597_v63  ;;  %v607_v4 = vmul.f32 0.041666668, %v605_v0 }
 0x166   : > { %612 = vst.msk [vmem:[%s1134_s30] sm:$0x1] %vm611_vm14, %v451_v42 }
 0x1b5   : > { %v619_v1 = vpop.permute.xlu1 %618  ;;  %v617_v2 = vpop.permute.xlu0 %616 }
 0x1b6   : > { %624 = vst.msk [vmem:[%s1134_s30 + $0x1] sm:$0x1] %vm622_vm15, %v619_v1  ;;  %623 = vst.msk [vmem:[%s1134_s30] sm:$0x1] %vm622_vm15, %v617_v2 }
 0x1b7   : > { %626 = vst.msk [vmem:[%s1134_s30] sm:$0x1] %vm625_vm0, %v364_v18  ;;  %627 = vst.msk [vmem:[%s1134_s30 + $0x1] sm:$0x1] %vm625_vm0, %v365_v17 }
 0x1b9   : > { %v631_v5 = vpop.permute.xlu1 %630  ;;  %v633_v6 = vpop.permute.xlu0 %632 }
 0x1ba   : > { %637 = vst.msk [vmem:[%s1134_s30] sm:$0x1] %vm636_vm1, %v631_v5  ;;  %638 = vst.msk [vmem:[%s1134_s30 + $0x1] sm:$0x1] %vm636_vm1, %v633_v6 }
 0x1bb   : > { %640 = vst.msk [vmem:[%s1134_s30] sm:$0x1] %vm639_vm2, %v606_v3  ;;  %641 = vst.msk [vmem:[%s1134_s30 + $0x1] sm:$0x1] %vm639_vm2, %v607_v4 }
 0x1bc   : > { %891 = shalt.err (!%p888_p3)
}
 0x1bd   : > { %s892_s14 = scalar_lea.hbm %s1153_s9, 32  ;;  %s896_s23 = scalar_lea.hbm %s1207_s4, 64 }
 0x1be   : > { %p893_p4 = scmp.ne.s32.totalorder %s1153_s9, %s892_s14  ;;  %p897_p9 = scmp.lt.s32.totalorder %s1153_s9, %s1207_s4 }
 0x1bf   : > { %p898_p10 = scmp.lt.s32.totalorder %s896_s23, %s892_s14 }
 0x1c0   : > { %p894_p7 = pnand %p893_p4, %p1010_p5 }
 0x1c1   : > { %p899_p11 = por %p898_p10, %p897_p9 }
 0x1c2   : > { %p895_p8 = pneg %p894_p7 }
 0x1c4   : > { %p900_p12 = pnand %p899_p11, %p895_p8 }
 0x1c6   : > { %903 = shalt.err (!%p900_p12)
}
 0x1c7   : > { %s945_s29 = smov 16   ;;  %s946_s30 = smov 1  }
 0x1c8   : > { %796 = dma.vmem_to_hbm [thread:$0]  (%p1010_p5), %s1155_s6, 32, %s1153_s9, %s1163_s19, %s945_s29, %s945_s29, %s946_s30  }
 0x1c9 PF: > { %p802_p13 = scmp.ge.s32.totalorder %s938_s18, 2  ;;  %s671_s5 = sand.u32 1, %s926_s15  }
 0x1ca   : > { %s672_s7 = scalar_lea.sflag [#allocation3], %s671_s5 }
 0x1cb   : > { %p799_p0 = pnand %p802_p13, %p1014_p6 }
 0x1cd   : > { %p800_p1 = pneg %p799_p0 }
 0x1cf   : > { %921 = dma.done.wait (%p800_p1), %s672_s7, 32  }
 0x1d0   : > { %923 = vsyncadd (%p800_p1), %s672_s7, 4294967264  ;;  %p14_p2 = scmp.ge.s32.totalorder %s997_s21, 4   ;;  %s1210_s15 = smov %s930_s16 }
 0x1d1   : > { %s1211_s16 = smov %s934_s17  ;;  %s1212_s17 = smov %s1008_s24 }
 0x1d2   : > { %s1213_s18 = smov %s997_s21  ;;  %16 = sbr.rel (!%p14_p2) target bundleno = 3 (0x3), region = 80 }
 0x1d7   :  { %677 = vsyncpa [#allocation3], 1 }
 0x1d8   :  { %679 = vsyncpa [#allocation3 + $0x1], 1 }

</bundles_post_ra>
